<compile_context>
chip_gen: v5e
topology: v5e:2x2
jax: 0.10.0
libtpu: 0.0.40
codegen_flags: <defaults>
</compile_context>

<pallas_src>
import jax
import jax.numpy as jnp
from jax.experimental import pallas as pl
from jax.experimental.pallas import tpu as pltpu

EPS = 1e-5


def convT_weight_to_conv(wt):
    # wt: PyTorch ConvTranspose2d weight of shape (Cin, Cout, 3, 3).
    # Equivalent dense conv weight in (kh, kw, Cin, Cout) matmul form:
    #   w[kh, kw, ci, co] = wt[ci, co, 2-kh, 2-kw]
    return jnp.transpose(jnp.flip(wt, axis=(2, 3)), (2, 3, 0, 1))


def build_band_weight(w, W):
    # w: (3, 3, C, C) dense-conv weight (kh, kw, cin, cout).
    # Returns band of shape (3, W*C, W*C) with
    #   band[kh, wi*C + ci, wo*C + co] = w[kh, wi - wo + 1, ci, co]
    # (zero outside the 3-tap band), so one matmul per kh performs the kw shifts,
    # the channel mixing and the W-boundary zero padding at once (lane-dense MXU).
    C = w.shape[2]
    wi = jnp.arange(W)
    wo = jnp.arange(W)
    kw = wi[:, None] - wo[None, :] + 1                        # (W, W)
    valid = ((kw >= 0) & (kw <= 2)).astype(w.dtype)
    band = w[:, jnp.clip(kw, 0, 2), :, :]                     # (3, wi, wo, ci, co)
    band = band * valid[None, :, :, None, None]
    band = jnp.transpose(band, (0, 1, 3, 2, 4))               # (3, wi, ci, wo, co)
    return band.reshape(3, W * C, W * C)


def skip_block_up(x_nchw, params):
    N, C, H, W = x_nchw.shape
    WC = W * C
    R = N * H
    inv_cnt = 1.0 / float(N * H * W)

    # NCHW -> lane-dense (N, H, W*C)
    x = jnp.transpose(x_nchw, (0, 2, 3, 1)).astype(jnp.float32).reshape(N, H, WC)

    wb1 = build_band_weight(convT_weight_to_conv(params["convoT1_w"]), W)
    wb2 = build_band_weight(convT_weight_to_conv(params["convoT2_w"]), W)

    def tile_c(v):   # (C,) -> (1, W*C) matching the [w, c] lane layout
        return jnp.tile(v.astype(jnp.float32), W).reshape(1, WC)

    b1, g1, be1 = tile_c(params["convoT1_b"]), tile_c(params["bn1_g"]), tile_c(params["bn1_b"])
    b2, g2, be2 = tile_c(params["convoT2_b"]), tile_c(params["bn2_g"]), tile_c(params["bn2_b"])

    # 0/1 matrix summing lanes that share a channel (keeps BN stats lane-resident).
    lane = jnp.arange(WC)
    gsum = (lane[:, None] % C == lane[None, :] % C).astype(jnp.float32)   # (WC, WC)

    def kernel(x_ref, wb1_ref, b1_ref, g1_ref, be1_ref,
               wb2_ref, b2_ref, g2_ref, be2_ref, gsum_ref,
               out_ref, pad_ref):
        # Zero ONLY the two halo rows of the padded scratch (once; reused by both convs).
        pad_ref[:, 0:1, :] = jnp.zeros((N, 1, WC), jnp.float32)
        pad_ref[:, H + 1:H + 2, :] = jnp.zeros((N, 1, WC), jnp.float32)

        gmat = gsum_ref[...]

        def conv_bn_relu(wb_ref, b_ref, g_ref, be_ref):
            # 3 lane-dense row-tap matmuls; the banded weight folds kw shifts +
            # channel mixing + W-boundary padding.  K = N_out = W*C.
            z = jnp.dot(pad_ref[:, 0:H, :].reshape(R, WC), wb_ref[0],
                        preferred_element_type=jnp.float32)
            z = z + jnp.dot(pad_ref[:, 1:H + 1, :].reshape(R, WC), wb_ref[1],
                            preferred_element_type=jnp.float32)
            z = z + jnp.dot(pad_ref[:, 2:H + 2, :].reshape(R, WC), wb_ref[2],
                            preferred_element_type=jnp.float32)
            z = z + b_ref[...]
            # Single-pass training-mode BatchNorm2d (biased variance) + ReLU.
            mean = jnp.dot(jnp.sum(z, axis=0, keepdims=True), gmat,
                           preferred_element_type=jnp.float32) * inv_cnt
            ex2 = jnp.dot(jnp.sum(z * z, axis=0, keepdims=True), gmat,
                          preferred_element_type=jnp.float32) * inv_cnt
            invstd = jax.lax.rsqrt(ex2 - mean * mean + EPS)
            scale = g_ref[...] * invstd
            shift = be_ref[...] - mean * scale
            return jnp.maximum(z * scale + shift, 0.0)

        # convoT1 -> bn1 -> relu (relu applied twice in the torch code; idempotent)
        pad_ref[:, 1:H + 1, :] = x_ref[...]
        o1 = conv_bn_relu(wb1_ref, b1_ref, g1_ref, be1_ref)

        # convoT2 -> bn2 -> relu  (in_ch == out_ch path); halo rows stay zero
        pad_ref[:, 1:H + 1, :] = o1.reshape(N, H, WC)
        o2 = conv_bn_relu(wb2_ref, b2_ref, g2_ref, be2_ref)

        # skip connection: out + identity (direct full-block read of unpadded x)
        out_ref[...] = o2.reshape(N, H, WC) + x_ref[...]

    args = (x, wb1, b1, g1, be1, wb2, b2, g2, be2, gsum)
    out = pl.pallas_call(
        kernel,
        out_shape=jax.ShapeDtypeStruct((N, H, WC), jnp.float32),
        in_specs=[pl.BlockSpec(memory_space=pltpu.MemorySpace.VMEM)] * len(args),
        out_specs=pl.BlockSpec(memory_space=pltpu.MemorySpace.VMEM),
        scratch_shapes=[pltpu.VMEM((N, H + 2, WC), jnp.float32)],
    )(*args)

    return jnp.transpose(out.reshape(N, H, W, C), (0, 3, 1, 2))   # back to NCHW


def skip_block_up_reference(x_nchw, params):
    # pure-JAX reference (same math, no Pallas) used only as a correctness check
    N, C, H, W = x_nchw.shape
    x = jnp.transpose(x_nchw, (0, 2, 3, 1)).astype(jnp.float32)

    def conv3x3(xin, wt, b):
        xp = jnp.pad(xin, ((0, 0), (1, 1), (1, 1), (0, 0)))
        w = convT_weight_to_conv(wt)
        acc = jnp.zeros((N, H, W, C), jnp.float32)
        for kh in range(3):
            for kw in range(3):
                acc = acc + jnp.einsum("nhwc,cd->nhwd",
                                       xp[:, kh:kh + H, kw:kw + W, :], w[kh, kw])
        return acc + b

    def bn_relu(z, g, be):
        m = jnp.mean(z, axis=(0, 1, 2), keepdims=True)
        v = jnp.mean((z - m) ** 2, axis=(0, 1, 2), keepdims=True)
        return jnp.maximum((z - m) / jnp.sqrt(v + EPS) * g + be, 0.0)

    o = bn_relu(conv3x3(x, params["convoT1_w"], params["convoT1_b"]),
                params["bn1_g"], params["bn1_b"])
    o = bn_relu(conv3x3(o, params["convoT2_w"], params["convoT2_b"]),
                params["bn2_g"], params["bn2_b"])
    o = o + x
    return jnp.transpose(o, (0, 3, 1, 2))


if __name__ == "__main__":
    N, C, H, W = 2, 4, 16, 16            # in_ch == out_ch == 4
    key = jax.random.PRNGKey(0)
    ks = jax.random.split(key, 9)

    x = jax.random.normal(ks[0], (N, C, H, W), jnp.float32)
    params = {
        "convoT1_w": 0.1 * jax.random.normal(ks[1], (C, C, 3, 3), jnp.float32),
        "convoT1_b": 0.1 * jax.random.normal(ks[2], (C,), jnp.float32),
        "convoT2_w": 0.1 * jax.random.normal(ks[3], (C, C, 3, 3), jnp.float32),
        "convoT2_b": 0.1 * jax.random.normal(ks[4], (C,), jnp.float32),
        "bn1_g": 1.0 + 0.1 * jax.random.normal(ks[5], (C,), jnp.float32),
        "bn1_b": 0.1 * jax.random.normal(ks[6], (C,), jnp.float32),
        "bn2_g": 1.0 + 0.1 * jax.random.normal(ks[7], (C,), jnp.float32),
        "bn2_b": 0.1 * jax.random.normal(ks[8], (C,), jnp.float32),
    }

    out = skip_block_up(x, params)
    out = jax.block_until_ready(out)

    ref = jax.block_until_ready(skip_block_up_reference(x, params))
    assert out.shape == (N, C, H, W)
    assert jnp.allclose(out, ref, atol=2e-4, rtol=2e-4), "mismatch vs reference"

    print("KERNEL_OK")
</pallas_src>

<mosaic_0001>
module attributes {stable_mosaic.version = 11 : i64} {
  func.func @kernel(%arg0: memref<2x16x64xf32, #tpu.memory_space<vmem>>, %arg1: memref<3x64x64xf32, #tpu.memory_space<vmem>>, %arg2: memref<1x64xf32, #tpu.memory_space<vmem>>, %arg3: memref<1x64xf32, #tpu.memory_space<vmem>>, %arg4: memref<1x64xf32, #tpu.memory_space<vmem>>, %arg5: memref<3x64x64xf32, #tpu.memory_space<vmem>>, %arg6: memref<1x64xf32, #tpu.memory_space<vmem>>, %arg7: memref<1x64xf32, #tpu.memory_space<vmem>>, %arg8: memref<1x64xf32, #tpu.memory_space<vmem>>, %arg9: memref<64x64xf32, #tpu.memory_space<vmem>>, %arg10: memref<2x16x64xf32, #tpu.memory_space<vmem>>, %arg11: memref<2x18x64xf32, #tpu.memory_space<vmem>>) attributes {dimension_semantics = [], scalar_prefetch = 0 : i64, scratch_operands = 1 : i64, tpu.core_type = #tpu.core_type<tc>} {
    %cst = arith.constant 0.000000e+00 : f32
    %0 = vector.broadcast %cst : f32 to vector<2x1x64xf32>
    %c0 = arith.constant 0 : index
    %c0_0 = arith.constant 0 : index
    %c0_1 = arith.constant 0 : index
    %1 = vector.load %arg11[%c0, %c0_0, %c0_1] : memref<2x18x64xf32, #tpu.memory_space<vmem>>, vector<2x1x64xf32>
    tpu.vector_store %arg11[%c0, %c0_0, %c0_1], %0 {strides = array<i32>} : memref<2x18x64xf32, #tpu.memory_space<vmem>>, vector<2x1x64xf32>,
    %cst_2 = arith.constant 0.000000e+00 : f32
    %2 = vector.broadcast %cst_2 : f32 to vector<2x1x64xf32>
    %c0_3 = arith.constant 0 : index
    %c17 = arith.constant 17 : index
    %c0_4 = arith.constant 0 : index
    %3 = vector.load %arg11[%c0_3, %c17, %c0_4] : memref<2x18x64xf32, #tpu.memory_space<vmem>>, vector<2x1x64xf32>
    tpu.vector_store %arg11[%c0_3, %c17, %c0_4], %2 {strides = array<i32>} : memref<2x18x64xf32, #tpu.memory_space<vmem>>, vector<2x1x64xf32>,
    %c0_5 = arith.constant 0 : index
    %c0_6 = arith.constant 0 : index
    %4 = vector.load %arg9[%c0_5, %c0_6] : memref<64x64xf32, #tpu.memory_space<vmem>>, vector<64x64xf32>
    %c0_7 = arith.constant 0 : index
    %c0_8 = arith.constant 0 : index
    %c0_9 = arith.constant 0 : index
    %5 = vector.load %arg0[%c0_7, %c0_8, %c0_9] : memref<2x16x64xf32, #tpu.memory_space<vmem>>, vector<2x16x64xf32>
    %c0_10 = arith.constant 0 : index
    %c1 = arith.constant 1 : index
    %c0_11 = arith.constant 0 : index
    %6 = vector.load %arg11[%c0_10, %c1, %c0_11] : memref<2x18x64xf32, #tpu.memory_space<vmem>>, vector<2x16x64xf32>
    tpu.vector_store %arg11[%c0_10, %c1, %c0_11], %5 {strides = array<i32>} : memref<2x18x64xf32, #tpu.memory_space<vmem>>, vector<2x16x64xf32>,
    %c0_12 = arith.constant 0 : index
    %c0_13 = arith.constant 0 : index
    %c0_14 = arith.constant 0 : index
    %7 = vector.load %arg11[%c0_12, %c0_13, %c0_14] : memref<2x18x64xf32, #tpu.memory_space<vmem>>, vector<2x16x64xf32>
    %8 = vector.shape_cast %7 : vector<2x16x64xf32> to vector<32x64xf32>
    %c0_15 = arith.constant 0 : index
    %c0_16 = arith.constant 0 : index
    %c0_17 = arith.constant 0 : index
    %9 = vector.load %arg1[%c0_15, %c0_16, %c0_17] : memref<3x64x64xf32, #tpu.memory_space<vmem>>, vector<1x64x64xf32>
    %10 = vector.shape_cast %9 : vector<1x64x64xf32> to vector<64x64xf32>
    %cst_18 = arith.constant dense<0.000000e+00> : vector<32x64xf32>
    %11 = tpu.matmul %8, %10, %cst_18 {dimension_numbers = #tpu.dot_dimension_numbers<[1], [0], [0], [1], [0, 0, 1, 1], [], []>} : vector<32x64xf32>, vector<64x64xf32>, vector<32x64xf32> -> vector<32x64xf32>
    %c0_19 = arith.constant 0 : index
    %c1_20 = arith.constant 1 : index
    %c0_21 = arith.constant 0 : index
    %12 = vector.load %arg11[%c0_19, %c1_20, %c0_21] : memref<2x18x64xf32, #tpu.memory_space<vmem>>, vector<2x16x64xf32>
    %13 = vector.shape_cast %12 : vector<2x16x64xf32> to vector<32x64xf32>
    %c1_22 = arith.constant 1 : index
    %c0_23 = arith.constant 0 : index
    %c0_24 = arith.constant 0 : index
    %14 = vector.load %arg1[%c1_22, %c0_23, %c0_24] : memref<3x64x64xf32, #tpu.memory_space<vmem>>, vector<1x64x64xf32>
    %15 = vector.shape_cast %14 : vector<1x64x64xf32> to vector<64x64xf32>
    %cst_25 = arith.constant dense<0.000000e+00> : vector<32x64xf32>
    %16 = tpu.matmul %13, %15, %cst_25 {dimension_numbers = #tpu.dot_dimension_numbers<[1], [0], [0], [1], [0, 0, 1, 1], [], []>} : vector<32x64xf32>, vector<64x64xf32>, vector<32x64xf32> -> vector<32x64xf32>
    %17 = arith.addf %11, %16 : vector<32x64xf32>
    %c0_26 = arith.constant 0 : index
    %c2 = arith.constant 2 : index
    %c0_27 = arith.constant 0 : index
    %18 = vector.load %arg11[%c0_26, %c2, %c0_27] : memref<2x18x64xf32, #tpu.memory_space<vmem>>, vector<2x16x64xf32>
    %19 = vector.shape_cast %18 : vector<2x16x64xf32> to vector<32x64xf32>
    %c2_28 = arith.constant 2 : index
    %c0_29 = arith.constant 0 : index
    %c0_30 = arith.constant 0 : index
    %20 = vector.load %arg1[%c2_28, %c0_29, %c0_30] : memref<3x64x64xf32, #tpu.memory_space<vmem>>, vector<1x64x64xf32>
    %21 = vector.shape_cast %20 : vector<1x64x64xf32> to vector<64x64xf32>
    %cst_31 = arith.constant dense<0.000000e+00> : vector<32x64xf32>
    %22 = tpu.matmul %19, %21, %cst_31 {dimension_numbers = #tpu.dot_dimension_numbers<[1], [0], [0], [1], [0, 0, 1, 1], [], []>} : vector<32x64xf32>, vector<64x64xf32>, vector<32x64xf32> -> vector<32x64xf32>
    %23 = arith.addf %17, %22 : vector<32x64xf32>
    %c0_32 = arith.constant 0 : index
    %c0_33 = arith.constant 0 : index
    %24 = vector.load %arg2[%c0_32, %c0_33] : memref<1x64xf32, #tpu.memory_space<vmem>>, vector<1x64xf32>
    %25 = vector.broadcast %24 : vector<1x64xf32> to vector<32x64xf32>
    %26 = arith.addf %23, %25 : vector<32x64xf32>
    %cst_34 = arith.constant dense<0.000000e+00> : vector<64xf32>
    %27 = vector.multi_reduction <add>, %26, %cst_34 [0] : vector<32x64xf32> to vector<64xf32>
    %28 = vector.shape_cast %27 : vector<64xf32> to vector<1x64xf32>
    %cst_35 = arith.constant dense<0.000000e+00> : vector<1x64xf32>
    %29 = tpu.matmul %28, %4, %cst_35 {dimension_numbers = #tpu.dot_dimension_numbers<[1], [0], [0], [1], [0, 0, 1, 1], [], []>} : vector<1x64xf32>, vector<64x64xf32>, vector<1x64xf32> -> vector<1x64xf32>
    %cst_36 = arith.constant 0.001953125 : f32
    %30 = vector.broadcast %cst_36 : f32 to vector<1x64xf32>
    %31 = arith.mulf %29, %30 : vector<1x64xf32>
    %32 = arith.mulf %26, %26 : vector<32x64xf32>
    %cst_37 = arith.constant dense<0.000000e+00> : vector<64xf32>
    %33 = vector.multi_reduction <add>, %32, %cst_37 [0] : vector<32x64xf32> to vector<64xf32>
    %34 = vector.shape_cast %33 : vector<64xf32> to vector<1x64xf32>
    %cst_38 = arith.constant dense<0.000000e+00> : vector<1x64xf32>
    %35 = tpu.matmul %34, %4, %cst_38 {dimension_numbers = #tpu.dot_dimension_numbers<[1], [0], [0], [1], [0, 0, 1, 1], [], []>} : vector<1x64xf32>, vector<64x64xf32>, vector<1x64xf32> -> vector<1x64xf32>
    %cst_39 = arith.constant 0.001953125 : f32
    %36 = vector.broadcast %cst_39 : f32 to vector<1x64xf32>
    %37 = arith.mulf %35, %36 : vector<1x64xf32>
    %38 = arith.mulf %31, %31 : vector<1x64xf32>
    %39 = arith.subf %37, %38 : vector<1x64xf32>
    %cst_40 = arith.constant 9.99999974E-6 : f32
    %40 = vector.broadcast %cst_40 : f32 to vector<1x64xf32>
    %41 = arith.addf %39, %40 : vector<1x64xf32>
    %42 = math.rsqrt %41 : vector<1x64xf32>
    %c0_41 = arith.constant 0 : index
    %c0_42 = arith.constant 0 : index
    %43 = vector.load %arg3[%c0_41, %c0_42] : memref<1x64xf32, #tpu.memory_space<vmem>>, vector<1x64xf32>
    %44 = arith.mulf %43, %42 : vector<1x64xf32>
    %c0_43 = arith.constant 0 : index
    %c0_44 = arith.constant 0 : index
    %45 = vector.load %arg4[%c0_43, %c0_44] : memref<1x64xf32, #tpu.memory_space<vmem>>, vector<1x64xf32>
    %46 = arith.mulf %31, %44 : vector<1x64xf32>
    %47 = arith.subf %45, %46 : vector<1x64xf32>
    %48 = vector.broadcast %44 : vector<1x64xf32> to vector<32x64xf32>
    %49 = arith.mulf %26, %48 : vector<32x64xf32>
    %50 = vector.broadcast %47 : vector<1x64xf32> to vector<32x64xf32>
    %51 = arith.addf %49, %50 : vector<32x64xf32>
    %cst_45 = arith.constant 0.000000e+00 : f32
    %52 = vector.broadcast %cst_45 : f32 to vector<32x64xf32>
    %53 = arith.maximumf %51, %52 : vector<32x64xf32>
    %54 = vector.shape_cast %53 : vector<32x64xf32> to vector<2x16x64xf32>
    %c0_46 = arith.constant 0 : index
    %c1_47 = arith.constant 1 : index
    %c0_48 = arith.constant 0 : index
    %55 = vector.load %arg11[%c0_46, %c1_47, %c0_48] : memref<2x18x64xf32, #tpu.memory_space<vmem>>, vector<2x16x64xf32>
    tpu.vector_store %arg11[%c0_46, %c1_47, %c0_48], %54 {strides = array<i32>} : memref<2x18x64xf32, #tpu.memory_space<vmem>>, vector<2x16x64xf32>,
    %c0_49 = arith.constant 0 : index
    %c0_50 = arith.constant 0 : index
    %c0_51 = arith.constant 0 : index
    %56 = vector.load %arg11[%c0_49, %c0_50, %c0_51] : memref<2x18x64xf32, #tpu.memory_space<vmem>>, vector<2x16x64xf32>
    %57 = vector.shape_cast %56 : vector<2x16x64xf32> to vector<32x64xf32>
    %c0_52 = arith.constant 0 : index
    %c0_53 = arith.constant 0 : index
    %c0_54 = arith.constant 0 : index
    %58 = vector.load %arg5[%c0_52, %c0_53, %c0_54] : memref<3x64x64xf32, #tpu.memory_space<vmem>>, vector<1x64x64xf32>
    %59 = vector.shape_cast %58 : vector<1x64x64xf32> to vector<64x64xf32>
    %cst_55 = arith.constant dense<0.000000e+00> : vector<32x64xf32>
    %60 = tpu.matmul %57, %59, %cst_55 {dimension_numbers = #tpu.dot_dimension_numbers<[1], [0], [0], [1], [0, 0, 1, 1], [], []>} : vector<32x64xf32>, vector<64x64xf32>, vector<32x64xf32> -> vector<32x64xf32>
    %c0_56 = arith.constant 0 : index
    %c1_57 = arith.constant 1 : index
    %c0_58 = arith.constant 0 : index
    %61 = vector.load %arg11[%c0_56, %c1_57, %c0_58] : memref<2x18x64xf32, #tpu.memory_space<vmem>>, vector<2x16x64xf32>
    %62 = vector.shape_cast %61 : vector<2x16x64xf32> to vector<32x64xf32>
    %c1_59 = arith.constant 1 : index
    %c0_60 = arith.constant 0 : index
    %c0_61 = arith.constant 0 : index
    %63 = vector.load %arg5[%c1_59, %c0_60, %c0_61] : memref<3x64x64xf32, #tpu.memory_space<vmem>>, vector<1x64x64xf32>
    %64 = vector.shape_cast %63 : vector<1x64x64xf32> to vector<64x64xf32>
    %cst_62 = arith.constant dense<0.000000e+00> : vector<32x64xf32>
    %65 = tpu.matmul %62, %64, %cst_62 {dimension_numbers = #tpu.dot_dimension_numbers<[1], [0], [0], [1], [0, 0, 1, 1], [], []>} : vector<32x64xf32>, vector<64x64xf32>, vector<32x64xf32> -> vector<32x64xf32>
    %66 = arith.addf %60, %65 : vector<32x64xf32>
    %c0_63 = arith.constant 0 : index
    %c2_64 = arith.constant 2 : index
    %c0_65 = arith.constant 0 : index
    %67 = vector.load %arg11[%c0_63, %c2_64, %c0_65] : memref<2x18x64xf32, #tpu.memory_space<vmem>>, vector<2x16x64xf32>
    %68 = vector.shape_cast %67 : vector<2x16x64xf32> to vector<32x64xf32>
    %c2_66 = arith.constant 2 : index
    %c0_67 = arith.constant 0 : index
    %c0_68 = arith.constant 0 : index
    %69 = vector.load %arg5[%c2_66, %c0_67, %c0_68] : memref<3x64x64xf32, #tpu.memory_space<vmem>>, vector<1x64x64xf32>
    %70 = vector.shape_cast %69 : vector<1x64x64xf32> to vector<64x64xf32>
    %cst_69 = arith.constant dense<0.000000e+00> : vector<32x64xf32>
    %71 = tpu.matmul %68, %70, %cst_69 {dimension_numbers = #tpu.dot_dimension_numbers<[1], [0], [0], [1], [0, 0, 1, 1], [], []>} : vector<32x64xf32>, vector<64x64xf32>, vector<32x64xf32> -> vector<32x64xf32>
    %72 = arith.addf %66, %71 : vector<32x64xf32>
    %c0_70 = arith.constant 0 : index
    %c0_71 = arith.constant 0 : index
    %73 = vector.load %arg6[%c0_70, %c0_71] : memref<1x64xf32, #tpu.memory_space<vmem>>, vector<1x64xf32>
    %74 = vector.broadcast %73 : vector<1x64xf32> to vector<32x64xf32>
    %75 = arith.addf %72, %74 : vector<32x64xf32>
    %cst_72 = arith.constant dense<0.000000e+00> : vector<64xf32>
    %76 = vector.multi_reduction <add>, %75, %cst_72 [0] : vector<32x64xf32> to vector<64xf32>
    %77 = vector.shape_cast %76 : vector<64xf32> to vector<1x64xf32>
    %cst_73 = arith.constant dense<0.000000e+00> : vector<1x64xf32>
    %78 = tpu.matmul %77, %4, %cst_73 {dimension_numbers = #tpu.dot_dimension_numbers<[1], [0], [0], [1], [0, 0, 1, 1], [], []>} : vector<1x64xf32>, vector<64x64xf32>, vector<1x64xf32> -> vector<1x64xf32>
    %cst_74 = arith.constant 0.001953125 : f32
    %79 = vector.broadcast %cst_74 : f32 to vector<1x64xf32>
    %80 = arith.mulf %78, %79 : vector<1x64xf32>
    %81 = arith.mulf %75, %75 : vector<32x64xf32>
    %cst_75 = arith.constant dense<0.000000e+00> : vector<64xf32>
    %82 = vector.multi_reduction <add>, %81, %cst_75 [0] : vector<32x64xf32> to vector<64xf32>
    %83 = vector.shape_cast %82 : vector<64xf32> to vector<1x64xf32>
    %cst_76 = arith.constant dense<0.000000e+00> : vector<1x64xf32>
    %84 = tpu.matmul %83, %4, %cst_76 {dimension_numbers = #tpu.dot_dimension_numbers<[1], [0], [0], [1], [0, 0, 1, 1], [], []>} : vector<1x64xf32>, vector<64x64xf32>, vector<1x64xf32> -> vector<1x64xf32>
    %cst_77 = arith.constant 0.001953125 : f32
    %85 = vector.broadcast %cst_77 : f32 to vector<1x64xf32>
    %86 = arith.mulf %84, %85 : vector<1x64xf32>
    %87 = arith.mulf %80, %80 : vector<1x64xf32>
    %88 = arith.subf %86, %87 : vector<1x64xf32>
    %cst_78 = arith.constant 9.99999974E-6 : f32
    %89 = vector.broadcast %cst_78 : f32 to vector<1x64xf32>
    %90 = arith.addf %88, %89 : vector<1x64xf32>
    %91 = math.rsqrt %90 : vector<1x64xf32>
    %c0_79 = arith.constant 0 : index
    %c0_80 = arith.constant 0 : index
    %92 = vector.load %arg7[%c0_79, %c0_80] : memref<1x64xf32, #tpu.memory_space<vmem>>, vector<1x64xf32>
    %93 = arith.mulf %92, %91 : vector<1x64xf32>
    %c0_81 = arith.constant 0 : index
    %c0_82 = arith.constant 0 : index
    %94 = vector.load %arg8[%c0_81, %c0_82] : memref<1x64xf32, #tpu.memory_space<vmem>>, vector<1x64xf32>
    %95 = arith.mulf %80, %93 : vector<1x64xf32>
    %96 = arith.subf %94, %95 : vector<1x64xf32>
    %97 = vector.broadcast %93 : vector<1x64xf32> to vector<32x64xf32>
    %98 = arith.mulf %75, %97 : vector<32x64xf32>
    %99 = vector.broadcast %96 : vector<1x64xf32> to vector<32x64xf32>
    %100 = arith.addf %98, %99 : vector<32x64xf32>
    %cst_83 = arith.constant 0.000000e+00 : f32
    %101 = vector.broadcast %cst_83 : f32 to vector<32x64xf32>
    %102 = arith.maximumf %100, %101 : vector<32x64xf32>
    %103 = vector.shape_cast %102 : vector<32x64xf32> to vector<2x16x64xf32>
    %c0_84 = arith.constant 0 : index
    %c0_85 = arith.constant 0 : index
    %c0_86 = arith.constant 0 : index
    %104 = vector.load %arg0[%c0_84, %c0_85, %c0_86] : memref<2x16x64xf32, #tpu.memory_space<vmem>>, vector<2x16x64xf32>
    %105 = arith.addf %103, %104 : vector<2x16x64xf32>
    %c0_87 = arith.constant 0 : index
    %c0_88 = arith.constant 0 : index
    %c0_89 = arith.constant 0 : index
    %106 = vector.load %arg10[%c0_87, %c0_88, %c0_89] : memref<2x16x64xf32, #tpu.memory_space<vmem>>, vector<2x16x64xf32>
    tpu.vector_store %arg10[%c0_87, %c0_88, %c0_89], %105 {strides = array<i32>} : memref<2x16x64xf32, #tpu.memory_space<vmem>>, vector<2x16x64xf32>,
    return
  }
}

</mosaic_0001>

<bundles_post_ra>
// kernel: tpu_custom_call.1
= control target key start
LH: loop header
LB: loop body
LE: loop exit
PB: predicated region body
PF: predicated region fallthrough
CT: control target
= control target key end

     0   :  { %15 = vsyncpa [#allocation4], 0  ;;  %s1180_s0 = inlined_call_operand.hbm [shape: f32[2,16,64], index: 0, kind: input, shape index: {}]   ;;  %s1181_s1 = inlined_call_operand.hbm [shape: f32[3,64,64], index: 1, kind: input, shape index: {}]   ;;  %s1182_s2 = inlined_call_operand.vmem [shape: f32[1,64], index: 2, kind: input, shape index: {}]   ;;  %s1183_s3 = inlined_call_operand.vmem [shape: f32[1,64], index: 3, kind: input, shape index: {}]   ;;  %s1184_s4 = inlined_call_operand.vmem [shape: f32[1,64], index: 4, kind: input, shape index: {}]   ;;  %s1185_s5 = inlined_call_operand.hbm [shape: f32[3,64,64], index: 5, kind: input, shape index: {}]   ;;  %s1186_s6 = inlined_call_operand.vmem [shape: f32[1,64], index: 6, kind: input, shape index: {}]   ;;  %s1187_s7 = inlined_call_operand.vmem [shape: f32[1,64], index: 7, kind: input, shape index: {}]   ;;  %s1188_s8 = inlined_call_operand.vmem [shape: f32[1,64], index: 8, kind: input, shape index: {}]   ;;  %s1189_s9 = inlined_call_operand.hbm [shape: f32[64,64], index: 9, kind: input, shape index: {}]   ;;  %s1190_s10 = inlined_call_operand.hbm [shape: f32[2,16,64], index: 10, kind: output, shape index: {}]  }
   0x1   :  { %16 = vsyncpa [#allocation7], 0 }
   0x2   :  { %17 = vsyncpa [#allocation10], 0 }
   0x3   :  { %18 = vsyncpa [#allocation5], 0  ;;  %s36_s15 = sshll.u32 %s1181_s1, 4  ;;  %s902_s16 = smov [#allocation6]   ;;  %s37_s15 = int_to_ptr.hbm [resolvable:$true] %s36_s15 }
   0x4   :  { %s38_s17 = sshll.u32 %s902_s16, 4  ;;  %s23_s20 = sshll.u32 %s1180_s0, 4  ;;  %s39_s17 = int_to_ptr.vmem [resolvable:$true] %s38_s17  ;;  %s24_s20 = int_to_ptr.hbm [resolvable:$true] %s23_s20 }
   0x5   :  { %s903_s21 = smov 128   ;;  %s904_s22 = smov 8  }
   0x6   :  { %44 = dma.hbm_to_vmem [thread:$0]  %s37_s15, 3072, %s39_s17, [#allocation7], %s903_s21, %s903_s21, %s904_s22  }
   0x7   :  { %s905_s23 = smov [#allocation3]   ;;  %s55_s1 = sshll.u32 %s1185_s5, 4  ;;  %s56_s1 = int_to_ptr.hbm [resolvable:$true] %s55_s1 }
   0x8   :  { %s25_s24 = sshll.u32 %s905_s23, 4  ;;  %s74_s28 = sshll.u32 %s1189_s9, 4  ;;  %s26_s24 = int_to_ptr.vmem [resolvable:$true] %s25_s24  ;;  %s75_s28 = int_to_ptr.hbm [resolvable:$true] %s74_s28 }
   0x9   :  { %31 = dma.hbm_to_vmem [thread:$0]  %s24_s20, 512, %s26_s24, [#allocation4], %s903_s21, %s903_s21, %s904_s22  }
   0xa   :  { %s906_s29 = smov [#allocation8]   ;;  %s907_s11 = smov [#allocation9]  }
   0xb   :  { %s57_s30 = sshll.u32 %s906_s29, 4  ;;  %s76_s5 = sshll.u32 %s907_s11, 4  ;;  %s58_s30 = int_to_ptr.vmem [resolvable:$true] %s57_s30  ;;  %s77_s5 = int_to_ptr.vmem [resolvable:$true] %s76_s5 }
   0xc   :  { %63 = dma.hbm_to_vmem [thread:$0]  %s56_s1, 3072, %s58_s30, [#allocation7], %s903_s21, %s903_s21, %s904_s22  }
   0xd   :  { %82 = dma.hbm_to_vmem [thread:$0]  %s75_s28, 1024, %s77_s5, [#allocation10], %s903_s21, %s903_s21, %s904_s22  }
   0xe   :  { %894 = dma.done.wait [#allocation4], 512  }
   0xf   :  { %895 = vsyncadd [#allocation4], 4294966784 }
  0x10   :  { %896 = dma.done.wait [#allocation7], 6144  }
  0x11   :  { %897 = vsyncadd [#allocation7], 4294961152 }
  0x12   :  { %898 = dma.done.wait [#allocation10], 1024  }
  0x13   :  { %899 = vsyncadd [#allocation10], 4294966272  ;;  %vm99_vm0 = vcmask 516096   ;;  %v908_v0 = vmov 0.0   ;;  %v240_v1 = vld [vmem:[#allocation6 + $0xb8] sm:$0xff]  ;;  %v239_v2 = vld [vmem:[#allocation6 + $0xb0] sm:$0xff] }
  0x14   :  { %100 = vst.msk [vmem:[#allocation2] sm:$0x1] %vm99_vm0, %v908_v0  ;;  %v145_v3 = vld [vmem:[#allocation6 + $0x78] sm:$0xff]  ;;  %261 = vmatpush.msra.mxu2 %v240_v1  ;;  %v144_v5 = vld [vmem:[#allocation6 + $0x70] sm:$0xff]  ;;  %v238_v6 = vld [vmem:[#allocation6 + $0xa8] sm:$0xff]  ;;  %vm116_vm1 = vcmask 523264  }
  0x15   :  { %101 = vst.msk [vmem:[#allocation2 + $0x18] sm:$0x1] %vm99_vm0, %v908_v0  ;;  %166 = vmatpush.msra.mxu0 %v145_v3  ;;  %v132_v4 = vld [vmem:[#allocation6 + $0x38] sm:$0xff]  ;;  %v131_v7 = vld [vmem:[#allocation6 + $0x30] sm:$0xff]  ;;  %v143_v8 = vld [vmem:[#allocation6 + $0x68] sm:$0xff]  ;;  %s717_s23 = sshll.u32 %s1190_s10, 4  ;;  %s718_s23 = int_to_ptr.hbm [resolvable:$true] %s717_s23 }
  0x16   :  { %102 = vst.msk [vmem:[#allocation2 + $0x11] sm:$0x1] %vm99_vm0, %v908_v0  ;;  %207 = vmatpush.msra.mxu1 %v132_v4  ;;  %262 = vmatpush.msra.mxu2 %v239_v2  ;;  %v130_v9 = vld [vmem:[#allocation6 + $0x28] sm:$0xff]  ;;  %v237_v10 = vld [vmem:[#allocation6 + $0xa0] sm:$0xff]  ;;  %v236_v13 = vld [vmem:[#allocation6 + $0x98] sm:$0xff] }
  0x17   :  { %103 = vst.msk [vmem:[#allocation2 + $0x29] sm:$0x1] %vm99_vm0, %v908_v0  ;;  %167 = vmatpush.msra.mxu0 %v144_v5  ;;  %v142_v11 = vld [vmem:[#allocation6 + $0x60] sm:$0xff]  ;;  %v141_v14 = vld [vmem:[#allocation6 + $0x58] sm:$0xff]  ;;  %v235_v16 = vld [vmem:[#allocation6 + $0x90] sm:$0xff] }
  0x18   :  { %208 = vmatpush.msra.mxu1 %v131_v7  ;;  %263 = vmatpush.msra.mxu2 %v238_v6  ;;  %v129_v12 = vld [vmem:[#allocation6 + $0x20] sm:$0xff]  ;;  %v128_v17 = vld [vmem:[#allocation6 + $0x18] sm:$0xff]  ;;  %v991_v18 = vld [vmem:[#allocation3 + $0x8] sm:$0xff] }
  0x19   :  { %168 = vmatpush.msra.mxu0 %v143_v8  ;;  %v989_v15 = vld [vmem:[#allocation3] sm:$0xff]  ;;  %v140_v19 = vld [vmem:[#allocation6 + $0x50] sm:$0xff]  ;;  %118 = vst.msk [vmem:[#allocation2 + $0x9] sm:$0xff] %vm116_vm1, %v991_v18  ;;  %v999_v22 = vld [vmem:[#allocation3 + $0x18] sm:$0xff] }
  0x1a   :  { %209 = vmatpush.msra.mxu1 %v130_v9  ;;  %264 = vmatpush.msra.mxu2 %v237_v10  ;;  %117 = vst.msk [vmem:[#allocation2 + $0x1] sm:$0xff] %vm116_vm1, %v989_v15  ;;  %v127_v20 = vld [vmem:[#allocation6 + $0x10] sm:$0xff]  ;;  %v234_v23 = vld [vmem:[#allocation6 + $0x88] sm:$0xff]  ;;  %v233_v26 = vld [vmem:[#allocation6 + $0x80] sm:$0xff] }
  0x1b   :  { %169 = vmatpush.msra.mxu0 %v142_v11  ;;  %v997_v21 = vld [vmem:[#allocation3 + $0x10] sm:$0xff]  ;;  %v139_v24 = vld [vmem:[#allocation6 + $0x48] sm:$0xff]  ;;  %120 = vst.msk [vmem:[#allocation2 + $0x21] sm:$0xff] %vm116_vm1, %v999_v22  ;;  %v138_v27 = vld [vmem:[#allocation6 + $0x40] sm:$0xff] }
  0x1c   :  { %210 = vmatpush.msra.mxu1 %v129_v12  ;;  %265 = vmatpush.msra.mxu2 %v236_v13  ;;  %119 = vst.msk [vmem:[#allocation2 + $0x19] sm:$0xff] %vm116_vm1, %v997_v21  ;;  %v126_v25 = vld [vmem:[#allocation6 + $0x8] sm:$0xff]  ;;  %v125_v28 = vld [vmem:[#allocation6] sm:$0xff]  ;;  %v1017_v41 = vld [vmem:[#allocation9 + $0x38] sm:$0xff] }
  0x1d   :  { %170 = vmatpush.msra.mxu0 %v141_v14  ;;  %318 = vmatpush.msra.mxu3 %v1017_v41  ;;  %v1020_v42 = vld [vmem:[#allocation9 + $0x30] sm:$0xff]  ;;  %v1023_v43 = vld [vmem:[#allocation9 + $0x28] sm:$0xff]  ;;  %v1026_v46 = vld [vmem:[#allocation9 + $0x20] sm:$0xff] }
  0x1e   :  { %211 = vmatpush.msra.mxu1 %v128_v17  ;;  %266 = vmatpush.msra.mxu2 %v235_v16  ;;  %v1029_v47 = vld [vmem:[#allocation9 + $0x18] sm:$0xff]  ;;  %v1032_v48 = vld [vmem:[#allocation9 + $0x10] sm:$0xff]  ;;  %v1035_v50 = vld [vmem:[#allocation9 + $0x8] sm:$0xff] }
  0x1f   :  { %171 = vmatpush.msra.mxu0 %v140_v19  ;;  %319 = vmatpush.msra.mxu3 %v1020_v42  ;;  %v1038_v51 = vld [vmem:[#allocation9] sm:$0xff]  ;;  %v768_v62 = vld [vmem:[%s1182_s2] ss:$0 sm:$0xff] }
  0x20   :  { %212 = vmatpush.msra.mxu1 %v127_v20  ;;  %267 = vmatpush.msra.mxu2 %v234_v23  ;;  %v229_v32 = vld [vmem:[#allocation2 + $0xa] sm:$0xff] }
  0x21   :  { %172 = vmatpush.msra.mxu0 %v139_v24  ;;  %v133_v29 = vld [vmem:[#allocation2 + $0x1] sm:$0xff]  ;;  %v134_v33 = vld [vmem:[#allocation2 + $0x9] sm:$0xff]  ;;  %320 = vmatpush.msra.mxu3 %v1023_v43 }
  0x22   :  { %213 = vmatpush.msra.mxu1 %v126_v25  ;;  %v121_v30 = vld [vmem:[#allocation2] sm:$0xff]  ;;  %268 = vmatpush.msra.mxu2 %v233_v26  ;;  %v122_v34 = vld [vmem:[#allocation2 + $0x8] sm:$0xff] }
  0x23   :  { %v228_v31 = vld [vmem:[#allocation2 + $0x2] sm:$0xff]  ;;  %173 = vmatpush.msra.mxu0 %v138_v27  ;;  %v230_v35 = vld [vmem:[#allocation2 + $0x1a] sm:$0xff]  ;;  %321 = vmatpush.msra.mxu3 %v1026_v46 }
  0x24   :  { %740 = vmatmul.msk.f32.vlgmr.msra.gmra.mxu2 %vm116_vm1, %v228_v31  ;;  %214 = vmatpush.msra.mxu1 %v125_v28  ;;  %v135_v36 = vld [vmem:[#allocation2 + $0x19] sm:$0xff]  ;;  %v231_v38 = vld [vmem:[#allocation2 + $0x22] sm:$0xff] }
  0x25   :  { %732 = vmatmul.msk.f32.vlgmr.msra.gmra.mxu0 %vm116_vm1, %v133_v29  ;;  %736 = vmatmul.msk.f32.vlgmr.msra.gmra.mxu1 %vm116_vm1, %v121_v30  ;;  %v123_v37 = vld [vmem:[#allocation2 + $0x18] sm:$0xff]  ;;  %v136_v39 = vld [vmem:[#allocation2 + $0x21] sm:$0xff] }
  0x26   :  { %v124_v40 = vld [vmem:[#allocation2 + $0x20] sm:$0xff]  ;;  %322 = vmatpush.msra.mxu3 %v1029_v47 }
  0x28   :  { %323 = vmatpush.msra.mxu3 %v1032_v48 }
  0x2a   :  { %324 = vmatpush.msra.mxu3 %v1035_v50 }
  0x2c   :  { %741 = vmatmul.msk.f32.gmra.mxu2 %vm116_vm1, %v229_v32  ;;  %325 = vmatpush.msra.mxu3 %v1038_v51 }
  0x2d   :  { %733 = vmatmul.msk.f32.gmra.mxu0 %vm116_vm1, %v134_v33  ;;  %737 = vmatmul.msk.f32.gmra.mxu1 %vm116_vm1, %v122_v34 }
  0x2e   :  { %359 = vmatpush.msrb.mxu3 %v1017_v41 }
  0x30   :  { %360 = vmatpush.msrb.mxu3 %v1020_v42 }
  0x32   :  { %361 = vmatpush.msrb.mxu3 %v1023_v43 }
  0x34   :  { %742 = vmatmul.msk.f32.gmra.mxu2 %vm116_vm1, %v230_v35  ;;  %362 = vmatpush.msrb.mxu3 %v1026_v46 }
  0x35   :  { %734 = vmatmul.msk.f32.gmra.mxu0 %vm116_vm1, %v135_v36  ;;  %738 = vmatmul.msk.f32.gmra.mxu1 %vm116_vm1, %v123_v37 }
  0x36   :  { %363 = vmatpush.msrb.mxu3 %v1029_v47 }
  0x38   :  { %364 = vmatpush.msrb.mxu3 %v1032_v48 }
  0x3a   :  { %365 = vmatpush.msrb.mxu3 %v1035_v50 }
  0x3c   :  { %743 = vmatmul.msk.f32.gmra.mxu2 %vm116_vm1, %v231_v38  ;;  %366 = vmatpush.msrb.mxu3 %v1038_v51 }
  0x3d   :  { %735 = vmatmul.msk.f32.gmra.mxu0 %vm116_vm1, %v136_v39  ;;  %739 = vmatmul.msk.f32.gmra.mxu1 %vm116_vm1, %v124_v40 }
  0xa2   :  { %v175_v44 = vpop.f32.mrf.mxu0  ;;  %v216_v45 = vpop.f32.mrf.mxu1 }
  0xa3   :  { %v217_v56 = vadd.f32 %v216_v45, %v175_v44 }
  0xa7   :  { %v270_v49 = vpop.f32.mrf.mxu2 }
  0xa8   :  { %v282_v61 = vadd.f32 %v270_v49, %v217_v56  ;;  %v423_v56 = vld [vmem:[#allocation8 + $0x38] sm:$0xff] }
  0xa9   :  { %498 = vmatpush.msrb.mxu1 %v423_v56 }
  0xaa   :  { %v178_v52 = vpop.f32.mrf.mxu0  ;;  %v219_v53 = vpop.f32.mrf.mxu1  ;;  %v1053_v2 = vadd.f32 %v768_v62, %v282_v61  ;;  %v433_v61 = vld [vmem:[#allocation8 + $0x60] sm:$0xff] }
  0xab   :  { %v220_v55 = vadd.f32 %v219_v53, %v178_v52 }
  0xac   :  { %v331_v8 = vmul.f32 %v1053_v2, %v1053_v2  ;;  %v294_v12 = vsel %vm116_vm1, %v1053_v2, 0.0 }
  0xae   :  { %v335_v19 = vsel %vm116_vm1, %v331_v8, 0.0  ;;  %v525_v8 = vld [vmem:[#allocation8 + $0x88] sm:$0xff] }
  0xaf   :  { %v273_v54 = vpop.f32.mrf.mxu2 }
  0xb0   :  { %v283_v59 = vadd.f32 %v273_v54, %v220_v55  ;;  %v531_v55 = vld [vmem:[#allocation8 + $0xb8] sm:$0xff] }
  0xb1   :  { %552 = vmatpush.msrb.mxu2 %v531_v55 }
  0xb2   :  { %v181_v57 = vpop.f32.mrf.mxu0  ;;  %v222_v58 = vpop.f32.mrf.mxu1  ;;  %v1050_v0 = vadd.f32 %v768_v62, %v283_v59 }
  0xb3   :  { %v223_v60 = vadd.f32 %v222_v58, %v181_v57  ;;  %v434_v57 = vld [vmem:[#allocation8 + $0x68] sm:$0xff] }
  0xb4   :  { %v332_v6 = vmul.f32 %v1050_v0, %v1050_v0  ;;  %v295_v9 = vsel %vm116_vm1, %v1050_v0, 0.0  ;;  %v421_v58 = vld [vmem:[#allocation8 + $0x28] sm:$0xff] }
  0xb5   :  { %v296_v17 = vadd.f32 %v295_v9, %v294_v12  ;;  %v430_v9 = vld [vmem:[#allocation8 + $0x48] sm:$0xff]  ;;  %v429_v12 = vld [vmem:[#allocation8 + $0x40] sm:$0xff] }
  0xb6   :  { %v336_v13 = vsel %vm116_vm1, %v332_v6, 0.0  ;;  %v431_v6 = vld [vmem:[#allocation8 + $0x50] sm:$0xff] }
  0xb7   :  { %v276_v63 = vpop.f32.mrf.mxu2  ;;  %v337_v24 = vadd.f32 %v336_v13, %v335_v19 }
  0xb8   :  { %v284_v1 = vadd.f32 %v276_v63, %v223_v60  ;;  %v528_v60 = vld [vmem:[#allocation8 + $0xa0] sm:$0xff]  ;;  %v527_v63 = vld [vmem:[#allocation8 + $0x98] sm:$0xff] }
  0xba   :  { %v1055_v3 = vadd.f32 %v768_v62, %v284_v1  ;;  %v184_v4 = vpop.f32.mrf.mxu0  ;;  %v225_v5 = vpop.f32.mrf.mxu1  ;;  %v432_v1 = vld [vmem:[#allocation8 + $0x58] sm:$0xff] }
  0xbb   :  { %v226_v7 = vadd.f32 %v225_v5, %v184_v4  ;;  %v419_v4 = vld [vmem:[#allocation8 + $0x18] sm:$0xff]  ;;  %v526_v5 = vld [vmem:[#allocation8 + $0x90] sm:$0xff] }
  0xbc   :  { %v333_v10 = vmul.f32 %v1055_v3, %v1055_v3  ;;  %v297_v14 = vsel %vm116_vm1, %v1055_v3, 0.0 }
  0xbd   :  { %v298_v25 = vadd.f32 %v297_v14, %v296_v17  ;;  %v416_v14 = vld [vmem:[#allocation8] sm:$0xff] }
  0xbe   :  { %v338_v20 = vsel %vm116_vm1, %v333_v10, 0.0  ;;  %v417_v10 = vld [vmem:[#allocation8 + $0x8] sm:$0xff] }
  0xbf   :  { %v279_v11 = vpop.f32.mrf.mxu2  ;;  %v339_v28 = vadd.f32 %v338_v20, %v337_v24 }
  0xc0   :  { %v285_v16 = vadd.f32 %v279_v11, %v226_v7  ;;  %v418_v7 = vld [vmem:[#allocation8 + $0x10] sm:$0xff]  ;;  %v524_v11 = vld [vmem:[#allocation8 + $0x80] sm:$0xff] }
  0xc2   :  { %v1073_v23 = vadd.f32 %v768_v62, %v285_v16  ;;  %v420_v62 = vld [vmem:[#allocation8 + $0x20] sm:$0xff] }
  0xc4   :  { %v299_v26 = vsel %vm116_vm1, %v1073_v23, 0.0  ;;  %v334_v27 = vmul.f32 %v1073_v23, %v1073_v23 }
  0xc5   :  { %v300_v29 = vadd.f32 %v299_v26, %v298_v25  ;;  %v385_v25 = vld [vmem:[%s1183_s3] sm:$0x1] }
  0xc6   :  { %v340_v30 = vsel %vm116_vm1, %v334_v27, 0.0 }
  0xc7   :  { %v341_v31 = vadd.f32 %v340_v30, %v339_v28  ;;  %v301_v32 = vrot.slane %v300_v29, 4  ;;  %v387_v28 = vld [vmem:[%s1184_s4] sm:$0x1] }
  0xc9   :  { %v342_v33 = vrot.slane %v341_v31, 4  ;;  %v302_v34 = vadd.f32 %v301_v32, %v300_v29 }
  0xcb   :  { %v303_v35 = vrot.slane %v302_v34, 2  ;;  %v343_v36 = vadd.f32 %v342_v33, %v341_v31 }
  0xcd   :  { %v304_v37 = vadd.f32 %v303_v35, %v302_v34  ;;  %v344_v38 = vrot.slane %v343_v36, 2 }
  0xcf   :  { %v305_v39 = vrot.slane %v304_v37, 1  ;;  %v345_v44 = vadd.f32 %v344_v38, %v343_v36 }
  0xd1   :  { %v306_v40 = vadd.f32 %v305_v39, %v304_v37  ;;  %v346_v45 = vrot.slane %v345_v44, 1 }
  0xd3   :  { %744 = vmatmul.msk.f32.vlgmr.msra.gmra.mxu3 %vm116_vm1, %v306_v40  ;;  %v347_v49 = vadd.f32 %v346_v45, %v345_v44 }
  0xd4   :  { %609 = vmatpush.msra.mxu3 %v1017_v41 }
  0xd6   :  { %610 = vmatpush.msra.mxu3 %v1020_v42 }
  0xd8   :  { %611 = vmatpush.msra.mxu3 %v1023_v43 }
  0xda   :  { %612 = vmatpush.msra.mxu3 %v1026_v46 }
  0xdb   :  { %745 = vmatmul.msk.f32.vlgmr.msrb.gmra.mxu3 %vm116_vm1, %v347_v49 }
  0xdc   :  { %613 = vmatpush.msra.mxu3 %v1029_v47 }
  0xde   :  { %614 = vmatpush.msra.mxu3 %v1032_v48 }
  0xe0   :  { %615 = vmatpush.msra.mxu3 %v1035_v50 }
  0xe2   :  { %616 = vmatpush.msra.mxu3 %v1038_v51 }
  0xe4   :  { %650 = vmatpush.msrb.mxu3 %v1017_v41  ;;  %v436_v41 = vld [vmem:[#allocation8 + $0x78] sm:$0xff] }
  0xe5   :  { %457 = vmatpush.msrb.mxu0 %v436_v41 }
  0xe6   :  { %651 = vmatpush.msrb.mxu3 %v1020_v42 }
  0xe8   :  { %652 = vmatpush.msrb.mxu3 %v1023_v43 }
  0xea   :  { %653 = vmatpush.msrb.mxu3 %v1026_v46  ;;  %v530_v46 = vld [vmem:[#allocation8 + $0xb0] sm:$0xff] }
  0xeb   :  { %553 = vmatpush.msrb.mxu2 %v530_v46 }
  0xec   :  { %654 = vmatpush.msrb.mxu3 %v1029_v47  ;;  %v435_v47 = vld [vmem:[#allocation8 + $0x70] sm:$0xff] }
  0xed   :  { %458 = vmatpush.msrb.mxu0 %v435_v47 }
  0xee   :  { %655 = vmatpush.msrb.mxu3 %v1032_v48  ;;  %v422_v48 = vld [vmem:[#allocation8 + $0x30] sm:$0xff] }
  0xef   :  { %499 = vmatpush.msrb.mxu1 %v422_v48  ;;  %459 = vmatpush.msrb.mxu0 %v434_v57 }
  0xf0   :  { %656 = vmatpush.msrb.mxu3 %v1035_v50 }
  0xf1   :  { %500 = vmatpush.msrb.mxu1 %v421_v58  ;;  %460 = vmatpush.msrb.mxu0 %v433_v61 }
  0xf2   :  { %657 = vmatpush.msrb.mxu3 %v1038_v51  ;;  %v529_v51 = vld [vmem:[#allocation8 + $0xa8] sm:$0xff] }
  0xf3   :  { %554 = vmatpush.msrb.mxu2 %v529_v51  ;;  %501 = vmatpush.msrb.mxu1 %v420_v62 }
  0xf4   :  { %461 = vmatpush.msrb.mxu0 %v432_v1 }
  0xf5   :  { %555 = vmatpush.msrb.mxu2 %v528_v60  ;;  %502 = vmatpush.msrb.mxu1 %v419_v4  ;;  %v769_v4 = vld [vmem:[%s1186_s6] ss:$0 sm:$0xff] }
  0xf6   :  { %462 = vmatpush.msrb.mxu0 %v431_v6 }
  0xf7   :  { %556 = vmatpush.msrb.mxu2 %v527_v63  ;;  %503 = vmatpush.msrb.mxu1 %v418_v7 }
  0xf8   :  { %463 = vmatpush.msrb.mxu0 %v430_v9 }
  0xf9   :  { %557 = vmatpush.msrb.mxu2 %v526_v5  ;;  %504 = vmatpush.msrb.mxu1 %v417_v10 }
  0xfa   :  { %464 = vmatpush.msrb.mxu0 %v429_v12 }
  0xfb   :  { %558 = vmatpush.msrb.mxu2 %v525_v8  ;;  %505 = vmatpush.msrb.mxu1 %v416_v14 }
  0xfd   :  { %559 = vmatpush.msrb.mxu2 %v524_v11 }
 0x156   :  { %v327_v52 = vpop.f32.mrf.mxu3 }
 0x157   :  { %v1098_v53 = vmul.f32 0.001953125, %v327_v52 }
 0x159   :  { %v372_v42 = vmul.f32 %v1098_v53, %v1098_v53 }
 0x15e   :  { %v368_v54 = vpop.f32.mrf.mxu3 }
 0x15f   :  { %v371_v43 = vmul.f32 0.001953125, %v368_v54 }
 0x161   :  { %v373_v50 = vsub.f32 %v371_v43, %v372_v42 }
 0x163   :  { %v374_v59 = vadd.f32 1e-05, %v373_v50 }
 0x165   :  { %770 = vrsqrt.f32 %v374_v59  ;;  %vm381_vm3 = vweird.f32 %v374_v59 }
 0x16b   :  { %v771_v13 = vpop.eup %770 }
 0x16c   :  { %v376_v16 = vmul.f32 %v771_v13, %v374_v59  ;;  %vm382_vm2 = vweird.f32 %v771_v13 }
 0x16d   :  { %vm383_vm4 = vmor %vm381_vm3, %vm382_vm2 }
 0x16e   :  { %v377_v17 = vmul.f32 %v771_v13, %v376_v16 }
 0x170   :  { %v378_v19 = vmul.f32 0.5, %v377_v17 }
 0x172   :  { %v379_v20 = vsub.f32 1.5, %v378_v19 }
 0x174   :  { %v380_v24 = vmul.f32 %v771_v13, %v379_v20 }
 0x176   :  { %v384_v26 = vsel %vm383_vm4, %v771_v13, %v380_v24 }
 0x177   :  { %v386_v27 = vmul.f32 %v385_v25, %v384_v26 }
 0x179   :  { %v388_v29 = vmul.f32 %v386_v27, %v1098_v53  ;;  %v391_v30 = vperm.slane %v386_v27, 0 }
 0x17b   :  { %v389_v31 = vsub.f32 %v387_v28, %v388_v29  ;;  %v393_v32 = vmul.f32 %v391_v30, %v1053_v2  ;;  %v394_v33 = vmul.f32 %v391_v30, %v1050_v0  ;;  %v395_v34 = vmul.f32 %v391_v30, %v1055_v3 }
 0x17c   :  { %v396_v35 = vmul.f32 %v391_v30, %v1073_v23 }
 0x17d   :  { %v398_v36 = vperm.slane %v389_v31, 0 }
 0x17f   :  { %v400_v37 = vadd.f32 %v398_v36, %v393_v32  ;;  %v401_v38 = vadd.f32 %v398_v36, %v394_v33  ;;  %v402_v39 = vadd.f32 %v398_v36, %v395_v34  ;;  %v403_v40 = vadd.f32 %v398_v36, %v396_v35 }
 0x181   :  { %v404_v44 = vmax.f32 %v400_v37, 0.0  ;;  %v405_v45 = vmax.f32 %v401_v38, 0.0  ;;  %v406_v49 = vmax.f32 %v402_v39, 0.0  ;;  %v407_v52 = vmax.f32 %v403_v40, 0.0 }
 0x183   :  { %408 = vst.msk [vmem:[#allocation2 + $0x1] sm:$0xff] %vm116_vm1, %v404_v44 }
 0x184   :  { %409 = vst.msk [vmem:[#allocation2 + $0x9] sm:$0xff] %vm116_vm1, %v405_v45 }
 0x185   :  { %410 = vst.msk [vmem:[#allocation2 + $0x19] sm:$0xff] %vm116_vm1, %v406_v49 }
 0x186   :  { %411 = vst.msk [vmem:[#allocation2 + $0x21] sm:$0xff] %vm116_vm1, %v407_v52 }
 0x18a   :  { %v424_v0 = vld [vmem:[#allocation2 + $0x1] sm:$0xff] }
 0x18b   :  { %v412_v2 = vld [vmem:[#allocation2] sm:$0xff]  ;;  %746 = vmatmul.msk.f32.vlgmr.msrb.gmra.mxu0 %vm116_vm1, %v424_v0  ;;  %v425_v23 = vld [vmem:[#allocation2 + $0x9] sm:$0xff] }
 0x18c   :  { %750 = vmatmul.msk.f32.vlgmr.msrb.gmra.mxu1 %vm116_vm1, %v412_v2  ;;  %v519_v3 = vld [vmem:[#allocation2 + $0x2] sm:$0xff]  ;;  %v520_v54 = vld [vmem:[#allocation2 + $0xa] sm:$0xff]  ;;  %v426_v55 = vld [vmem:[#allocation2 + $0x19] sm:$0xff] }
 0x18d   :  { %754 = vmatmul.msk.f32.vlgmr.msrb.gmra.mxu2 %vm116_vm1, %v519_v3  ;;  %v413_v53 = vld [vmem:[#allocation2 + $0x8] sm:$0xff]  ;;  %v414_v41 = vld [vmem:[#allocation2 + $0x18] sm:$0xff]  ;;  %v415_v43 = vld [vmem:[#allocation2 + $0x20] sm:$0xff] }
 0x18e   :  { %v521_v56 = vld [vmem:[#allocation2 + $0x1a] sm:$0xff]  ;;  %v522_v46 = vld [vmem:[#allocation2 + $0x22] sm:$0xff] }
 0x18f   :  { %v427_v42 = vld [vmem:[#allocation2 + $0x21] sm:$0xff] }
 0x193   :  { %747 = vmatmul.msk.f32.gmra.mxu0 %vm116_vm1, %v425_v23 }
 0x194   :  { %751 = vmatmul.msk.f32.gmra.mxu1 %vm116_vm1, %v413_v53 }
 0x195   :  { %755 = vmatmul.msk.f32.gmra.mxu2 %vm116_vm1, %v520_v54 }
 0x19b   :  { %748 = vmatmul.msk.f32.gmra.mxu0 %vm116_vm1, %v426_v55 }
 0x19c   :  { %752 = vmatmul.msk.f32.gmra.mxu1 %vm116_vm1, %v414_v41 }
 0x19d   :  { %756 = vmatmul.msk.f32.gmra.mxu2 %vm116_vm1, %v521_v56 }
 0x1a3   :  { %749 = vmatmul.msk.f32.gmra.mxu0 %vm116_vm1, %v427_v42 }
 0x1a4   :  { %753 = vmatmul.msk.f32.gmra.mxu1 %vm116_vm1, %v415_v43 }
 0x1a5   :  { %757 = vmatmul.msk.f32.gmra.mxu2 %vm116_vm1, %v522_v46 }
 0x208   :  { %v466_v47 = vpop.f32.mrf.mxu0 }
 0x209   :  { %v507_v48 = vpop.f32.mrf.mxu1 }
 0x20a   :  { %v508_v62 = vadd.f32 %v507_v48, %v466_v47 }
 0x210   :  { %v561_v50 = vpop.f32.mrf.mxu2  ;;  %v469_v51 = vpop.f32.mrf.mxu0 }
 0x211   :  { %v510_v57 = vpop.f32.mrf.mxu1  ;;  %v573_v1 = vadd.f32 %v561_v50, %v508_v62 }
 0x212   :  { %v511_v61 = vadd.f32 %v510_v57, %v469_v51 }
 0x213   :  { %v1134_v9 = vadd.f32 %v769_v4, %v573_v1  ;;  %v678_v1 = vld [vmem:[%s1188_s8] sm:$0x1] }
 0x215   :  { %v622_v14 = vmul.f32 %v1134_v9, %v1134_v9  ;;  %v585_v24 = vsel %vm116_vm1, %v1134_v9, 0.0 }
 0x217   :  { %v626_v29 = vsel %vm116_vm1, %v622_v14, 0.0 }
 0x218   :  { %v564_v58 = vpop.f32.mrf.mxu2  ;;  %v472_v59 = vpop.f32.mrf.mxu0 }
 0x219   :  { %v513_v60 = vpop.f32.mrf.mxu1  ;;  %v574_v63 = vadd.f32 %v564_v58, %v511_v61  ;;  %v676_v61 = vld [vmem:[%s1187_s7] sm:$0x1]  ;;  %s909_s7 = smov [#allocation11]  }
 0x21a   :  { %v514_v5 = vadd.f32 %v513_v60, %v472_v59  ;;  %s715_s8 = sshll.u32 %s909_s7, 4  ;;  %s716_s8 = int_to_ptr.vmem [resolvable:$true] %s715_s8 }
 0x21b   :  { %v1132_v7 = vadd.f32 %v769_v4, %v574_v63 }
 0x21d   :  { %v623_v13 = vmul.f32 %v1132_v7, %v1132_v7  ;;  %v586_v16 = vsel %vm116_vm1, %v1132_v7, 0.0 }
 0x21e   :  { %v587_v28 = vadd.f32 %v586_v16, %v585_v24 }
 0x21f   :  { %v627_v25 = vsel %vm116_vm1, %v623_v13, 0.0 }
 0x220   :  { %v567_v6 = vpop.f32.mrf.mxu2  ;;  %v475_v11 = vpop.f32.mrf.mxu0  ;;  %v628_v32 = vadd.f32 %v627_v25, %v626_v29 }
 0x221   :  { %v575_v8 = vadd.f32 %v567_v6, %v514_v5  ;;  %v516_v12 = vpop.f32.mrf.mxu1 }
 0x222   :  { %v517_v19 = vadd.f32 %v516_v12, %v475_v11 }
 0x223   :  { %v1136_v10 = vadd.f32 %v769_v4, %v575_v8 }
 0x225   :  { %v624_v17 = vmul.f32 %v1136_v10, %v1136_v10  ;;  %v588_v26 = vsel %vm116_vm1, %v1136_v10, 0.0 }
 0x226   :  { %v589_v33 = vadd.f32 %v588_v26, %v587_v28 }
 0x227   :  { %v629_v30 = vsel %vm116_vm1, %v624_v17, 0.0 }
 0x228   :  { %v570_v20 = vpop.f32.mrf.mxu2  ;;  %v630_v36 = vadd.f32 %v629_v30, %v628_v32 }
 0x229   :  { %v576_v27 = vadd.f32 %v570_v20, %v517_v19 }
 0x22b   :  { %v584_v31 = vadd.f32 %v769_v4, %v576_v27 }
 0x22d   :  { %v590_v34 = vsel %vm116_vm1, %v584_v31, 0.0  ;;  %v625_v35 = vmul.f32 %v584_v31, %v584_v31 }
 0x22e   :  { %v591_v37 = vadd.f32 %v590_v34, %v589_v33 }
 0x22f   :  { %v631_v38 = vsel %vm116_vm1, %v625_v35, 0.0 }
 0x230   :  { %v592_v39 = vrot.slane %v591_v37, 4  ;;  %v632_v40 = vadd.f32 %v631_v38, %v630_v36 }
 0x232   :  { %v593_v44 = vadd.f32 %v592_v39, %v591_v37  ;;  %v633_v45 = vrot.slane %v632_v40, 4 }
 0x234   :  { %v594_v49 = vrot.slane %v593_v44, 2  ;;  %v634_v52 = vadd.f32 %v633_v45, %v632_v40 }
 0x236   :  { %v595_v0 = vadd.f32 %v594_v49, %v593_v44  ;;  %v635_v2 = vrot.slane %v634_v52, 2 }
 0x238   :  { %v596_v3 = vrot.slane %v595_v0, 1  ;;  %v636_v53 = vadd.f32 %v635_v2, %v634_v52 }
 0x23a   :  { %v597_v23 = vadd.f32 %v596_v3, %v595_v0  ;;  %v637_v54 = vrot.slane %v636_v53, 1 }
 0x23c   :  { %758 = vmatmul.msk.f32.vlgmr.msra.gmra.mxu3 %vm116_vm1, %v597_v23  ;;  %v638_v55 = vadd.f32 %v637_v54, %v636_v53 }
 0x244   :  { %759 = vmatmul.msk.f32.vlgmr.msrb.gmra.mxu3 %vm116_vm1, %v638_v55 }
 0x2bf   :  { %v618_v41 = vpop.f32.mrf.mxu3 }
 0x2c0   :  { %v621_v56 = vmul.f32 0.001953125, %v618_v41 }
 0x2c2   :  { %v663_v43 = vmul.f32 %v621_v56, %v621_v56 }
 0x2c7   :  { %v659_v42 = vpop.f32.mrf.mxu3 }
 0x2c8   :  { %v662_v46 = vmul.f32 0.001953125, %v659_v42 }
 0x2ca   :  { %v664_v47 = vsub.f32 %v662_v46, %v663_v43 }
 0x2cc   :  { %v665_v48 = vadd.f32 1e-05, %v664_v47 }
 0x2ce   :  { %772 = vrsqrt.f32 %v665_v48  ;;  %vm672_vm6 = vweird.f32 %v665_v48 }
 0x2d4   :  { %v773_v50 = vpop.eup %772 }
 0x2d5   :  { %v667_v51 = vmul.f32 %v773_v50, %v665_v48  ;;  %vm673_vm5 = vweird.f32 %v773_v50 }
 0x2d6   :  { %vm674_vm7 = vmor %vm672_vm6, %vm673_vm5 }
 0x2d7   :  { %v668_v57 = vmul.f32 %v773_v50, %v667_v51 }
 0x2d9   :  { %v669_v58 = vmul.f32 0.5, %v668_v57 }
 0x2db   :  { %v670_v59 = vsub.f32 1.5, %v669_v58 }
 0x2dd   :  { %v671_v60 = vmul.f32 %v773_v50, %v670_v59 }
 0x2df   :  { %v675_v62 = vsel %vm674_vm7, %v773_v50, %v671_v60 }
 0x2e0   :  { %v677_v63 = vmul.f32 %v676_v61, %v675_v62 }
 0x2e2   :  { %v679_v4 = vmul.f32 %v677_v63, %v621_v56  ;;  %v682_v5 = vperm.slane %v677_v63, 0 }
 0x2e4   :  { %v680_v6 = vsub.f32 %v678_v1, %v679_v4  ;;  %v684_v8 = vmul.f32 %v682_v5, %v1134_v9  ;;  %v685_v12 = vmul.f32 %v682_v5, %v1132_v7  ;;  %v686_v13 = vmul.f32 %v682_v5, %v1136_v10 }
 0x2e5   :  { %v687_v14 = vmul.f32 %v682_v5, %v584_v31 }
 0x2e6   :  { %v689_v11 = vperm.slane %v680_v6, 0 }
 0x2e8   :  { %v691_v16 = vadd.f32 %v689_v11, %v684_v8  ;;  %v692_v17 = vadd.f32 %v689_v11, %v685_v12  ;;  %v693_v19 = vadd.f32 %v689_v11, %v686_v13  ;;  %v694_v20 = vadd.f32 %v689_v11, %v687_v14 }
 0x2ea   :  { %v695_v24 = vmax.f32 %v691_v16, 0.0  ;;  %v696_v25 = vmax.f32 %v692_v17, 0.0  ;;  %v697_v26 = vmax.f32 %v693_v19, 0.0  ;;  %v698_v27 = vmax.f32 %v694_v20, 0.0 }
 0x2ec   :  { %v703_v28 = vadd.f32 %v695_v24, %v989_v15  ;;  %v704_v29 = vadd.f32 %v696_v25, %v991_v18  ;;  %v705_v9 = vadd.f32 %v697_v26, %v997_v21  ;;  %v706_v7 = vadd.f32 %v698_v27, %v999_v22 }
 0x2ee   :  { %707 = vst.msk [vmem:[#allocation11] sm:$0xff] %vm116_vm1, %v703_v28 }
 0x2ef   :  { %708 = vst.msk [vmem:[#allocation11 + $0x8] sm:$0xff] %vm116_vm1, %v704_v29 }
 0x2f0   :  { %709 = vst.msk [vmem:[#allocation11 + $0x10] sm:$0xff] %vm116_vm1, %v705_v9 }
 0x2f1   :  { %710 = vst.msk [vmem:[#allocation11 + $0x18] sm:$0xff] %vm116_vm1, %v706_v7 }
 0x2f2   :  { %723 = dma.vmem_to_hbm [thread:$0]  %s716_s8, 512, %s718_s23, [#allocation5], %s903_s21, %s903_s21, %s904_s22  }
 0x2f3   :  { %900 = dma.done.wait [#allocation5], 512  }
 0x2f4   :  { %901 = vsyncadd [#allocation5], 4294966784 }
 0x2f5   :  { %728 = vsyncpa [#allocation4], 1 }
 0x2f6   :  { %729 = vsyncpa [#allocation7], 1 }
 0x2f7   :  { %730 = vsyncpa [#allocation10], 1 }
 0x2f8   :  { %731 = vsyncpa [#allocation5], 1 }

</bundles_post_ra>
